<compile_context>
chip_gen: v7x
topology: tpu7x:2x2x1
jax: 0.10.0
libtpu: 0.0.40
codegen_flags: <defaults>
</compile_context>

<pallas_src>
import jax
import jax.numpy as jnp
from jax.experimental import pallas as pl
from jax.experimental.pallas import tpu as pltpu


def _biaffine_kernel(e_ref, f_ref, wt_ref, o_ref):
    """Accumulate o += rowsum((E @ W^T[:, kblk]) * F[:, kblk]) for one tile.

    e_ref  : (TM, H)   activation row tile (resident across the k axis)
    f_ref  : (TM, TK)  matching column slice of code_specific_features
    wt_ref : (H, TK)   column slice of the pre-transposed nn.Linear weight
    o_ref  : (TM, 1)   f32 logits accumulator (same block across the k axis)
    """
    k = pl.program_id(1)

    @pl.when(k == 0)
    def _():
        o_ref[...] = jnp.zeros_like(o_ref)

    te = jnp.dot(e_ref[...], wt_ref[...], preferred_element_type=jnp.float32)
    prod = te * f_ref[...].astype(jnp.float32)
    o_ref[...] += jnp.sum(prod, axis=-1, keepdims=True)


def _plain_kernel(e_ref, f_ref, o_ref):
    """o = rowsum(E * F) for one (TM, H) row tile."""
    prod = e_ref[...].astype(jnp.float32) * f_ref[...].astype(jnp.float32)
    o_ref[...] = jnp.sum(prod, axis=-1, keepdims=True)


def _round_up(x, m):
    return (x + m - 1) // m * m


def _pick_k_tile(H, itemsize, max_bytes=4 * 1024 * 1024):
    """Column-tile of W^T: keep a streamed (H, TK) slice <= ~4 MiB, TK | H."""
    if H * H * itemsize <= max_bytes:
        return H
    for tk in (1024, 512, 256, 128):
        if H % tk == 0 and H * tk * itemsize <= max_bytes:
            return tk
    # TODO(synk): mask ragged K tiles for unusual huge hidden sizes.
    return H


def linear_classifier(code_embedding, code_specific_features, bias,
                      weight=None, *, use_biaffine=False, block_rows=None):
    """Pallas implementation of LinearClassifier.forward.

    code_embedding:          (B, L, H)
    code_specific_features:  (B, L, H)
    bias:                    (L,)
    weight:                  (H, H)  nn.Linear weight (out, in) — biaffine only
    returns logits:          (B, L)  float32
    """
    B, L, H = code_embedding.shape
    M = B * L

    # Flatten in the wrapper (free layout plumbing); kernel sees 2D tiles only.
    e2 = code_embedding.reshape(M, H)
    f2 = code_specific_features.reshape(M, H)

    if block_rows is None:
        block_rows = 256 if use_biaffine else 512
    tm = block_rows if M >= block_rows else _round_up(M, 8)
    nm = pl.cdiv(M, tm)

    out_shape = jax.ShapeDtypeStruct((M, 1), jnp.float32)
    act_bytes = e2.size * e2.dtype.itemsize + f2.size * f2.dtype.itemsize
    out_bytes = M * 4

    if use_biaffine:
        assert weight is not None and weight.shape == (H, H)
        # Pre-transpose once in XLA so the kernel never runs an XLU transpose.
        wt = jnp.transpose(weight)                        # (in, out)
        tk = _pick_k_tile(H, wt.dtype.itemsize)
        nk = max(1, H // tk)

        e_spec = pl.BlockSpec((tm, H), lambda i, k: (i, 0))   # resident over k
        f_spec = pl.BlockSpec((tm, tk), lambda i, k: (i, k))
        w_spec = pl.BlockSpec((H, tk), lambda i, k: (0, k))
        o_spec = pl.BlockSpec((tm, 1), lambda i, k: (i, 0))   # accumulator

        cost = pl.CostEstimate(
            flops=2 * M * H * H + 3 * M * H,
            transcendentals=0,
            bytes_accessed=act_bytes + out_bytes + wt.size * wt.dtype.itemsize,
        )
        out = pl.pallas_call(
            _biaffine_kernel,
            grid=(nm, nk),
            in_specs=[e_spec, f_spec, w_spec],
            out_specs=o_spec,
            out_shape=out_shape,
            compiler_params=pltpu.CompilerParams(
                dimension_semantics=("parallel", "arbitrary")),
            cost_estimate=cost,
        )(e2, f2, wt)
    else:
        row_spec = pl.BlockSpec((tm, H), lambda i: (i, 0))
        o_spec = pl.BlockSpec((tm, 1), lambda i: (i, 0))
        cost = pl.CostEstimate(
            flops=2 * M * H,
            transcendentals=0,
            bytes_accessed=act_bytes + out_bytes,
        )
        out = pl.pallas_call(
            _plain_kernel,
            grid=(nm,),
            in_specs=[row_spec, row_spec],
            out_specs=o_spec,
            out_shape=out_shape,
            compiler_params=pltpu.CompilerParams(
                dimension_semantics=("parallel",)),
            cost_estimate=cost,
        )(e2, f2)

    logits = out[:, 0].reshape(B, L)
    # Bias is O(B*L) output-side work; keep it as a plain XLA add.
    return logits + bias.astype(jnp.float32)[None, :]


def _reference(e, f, bias, weight=None, use_biaffine=False):
    e = e.astype(jnp.float32)
    f = f.astype(jnp.float32)
    if use_biaffine:
        e = jnp.einsum("blh,kh->blk", e, weight.astype(jnp.float32))
    return jnp.sum(e * f, axis=2) + bias.astype(jnp.float32)


if __name__ == "__main__":
    key = jax.random.PRNGKey(0)
    k_e, k_f, k_w, _ = jax.random.split(key, 4)

    B, L, H = 2, 8, 32  # batch, num_labels, hidden_size

    code_embedding = jax.random.normal(k_e, (B, L, H), dtype=jnp.float32)
    code_specific_features = jax.random.normal(k_f, (B, L, H), dtype=jnp.float32)

    # Deterministic parameter init (module __init__: bias is zeros).
    weight = jax.random.normal(k_w, (H, H), dtype=jnp.float32) * 0.05
    bias = jnp.zeros((L,), dtype=jnp.float32)

    # use_biaffine = True path (MXU matmul, weight column streaming, k-accum)
    logits = linear_classifier(code_embedding, code_specific_features, bias,
                               weight=weight, use_biaffine=True)
    logits = jax.block_until_ready(logits)
    ref = _reference(code_embedding, code_specific_features, bias,
                     weight=weight, use_biaffine=True)

    # use_biaffine = False path (mem-bound row-wise dot product)
    logits_plain = linear_classifier(code_embedding, code_specific_features,
                                     bias, use_biaffine=False)
    logits_plain = jax.block_until_ready(logits_plain)
    ref_plain = _reference(code_embedding, code_specific_features, bias,
                           use_biaffine=False)

    assert logits.shape == (B, L)
    assert logits_plain.shape == (B, L)
    assert jnp.allclose(logits, ref, atol=1e-5, rtol=1e-5)
    assert jnp.allclose(logits_plain, ref_plain, atol=1e-5, rtol=1e-5)
    print("KERNEL_OK")
</pallas_src>

<mosaic_0001>
module attributes {stable_mosaic.version = 11 : i64} {
  func.func @_biaffine_kernel(%arg0: i32, %arg1: i32, %arg2: memref<16x32xf32, #tpu.memory_space<vmem>>, %arg3: memref<16x32xf32, #tpu.memory_space<vmem>>, %arg4: memref<32x32xf32, #tpu.memory_space<vmem>>, %arg5: memref<16x1xf32, #tpu.memory_space<vmem>>) attributes {dimension_semantics = [#tpu.dimension_semantics<parallel>, #tpu.dimension_semantics<arbitrary>], iteration_bounds = array<i64: 1, 1>, scalar_prefetch = 0 : i64, scratch_operands = 0 : i64, tpu.core_type = #tpu.core_type<tc>, window_params = [{transform_indices = @transform_0, window_bounds = array<i64: 16, 32>}, {transform_indices = @transform_1, window_bounds = array<i64: 16, 32>}, {transform_indices = @transform_2, window_bounds = array<i64: 32, 32>}, {transform_indices = @transform_3, window_bounds = array<i64: 16, 1>}]} {
    %c0_i32 = arith.constant 0 : i32
    %0 = arith.cmpi eq, %arg1, %c0_i32 : i32
    %1 = arith.extui %0 : i1 to i32
    %c0_i32_0 = arith.constant 0 : i32
    %2 = arith.cmpi ne, %1, %c0_i32_0 : i32
    scf.if %2 {
      %cst_11 = arith.constant 0.000000e+00 : f32
      %13 = vector.broadcast %cst_11 : f32 to vector<16x1xf32>
      %c0_12 = arith.constant 0 : index
      %c0_13 = arith.constant 0 : index
      %14 = vector.load %arg5[%c0_12, %c0_13] : memref<16x1xf32, #tpu.memory_space<vmem>>, vector<16x1xf32>
      tpu.vector_store %arg5[%c0_12, %c0_13], %13 {strides = array<i32>} : memref<16x1xf32, #tpu.memory_space<vmem>>, vector<16x1xf32>,
    } else {
    }
    %c0 = arith.constant 0 : index
    %c0_1 = arith.constant 0 : index
    %3 = vector.load %arg2[%c0, %c0_1] : memref<16x32xf32, #tpu.memory_space<vmem>>, vector<16x32xf32>
    %c0_2 = arith.constant 0 : index
    %c0_3 = arith.constant 0 : index
    %4 = vector.load %arg4[%c0_2, %c0_3] : memref<32x32xf32, #tpu.memory_space<vmem>>, vector<32x32xf32>
    %cst = arith.constant dense<0.000000e+00> : vector<16x32xf32>
    %5 = tpu.matmul %3, %4, %cst {dimension_numbers = #tpu.dot_dimension_numbers<[1], [0], [0], [1], [0, 0, 1, 1], [], []>} : vector<16x32xf32>, vector<32x32xf32>, vector<16x32xf32> -> vector<16x32xf32>
    %c0_4 = arith.constant 0 : index
    %c0_5 = arith.constant 0 : index
    %6 = vector.load %arg3[%c0_4, %c0_5] : memref<16x32xf32, #tpu.memory_space<vmem>>, vector<16x32xf32>
    %7 = arith.mulf %5, %6 : vector<16x32xf32>
    %c0_6 = arith.constant 0 : index
    %c0_7 = arith.constant 0 : index
    %8 = vector.load %arg5[%c0_6, %c0_7] : memref<16x1xf32, #tpu.memory_space<vmem>>, vector<16x1xf32>
    %cst_8 = arith.constant dense<0.000000e+00> : vector<16xf32>
    %9 = vector.multi_reduction <add>, %7, %cst_8 [1] : vector<16x32xf32> to vector<16xf32>
    %10 = vector.shape_cast %9 : vector<16xf32> to vector<16x1xf32>
    %11 = arith.addf %8, %10 : vector<16x1xf32>
    %c0_9 = arith.constant 0 : index
    %c0_10 = arith.constant 0 : index
    %12 = vector.load %arg5[%c0_9, %c0_10] : memref<16x1xf32, #tpu.memory_space<vmem>>, vector<16x1xf32>
    tpu.vector_store %arg5[%c0_9, %c0_10], %11 {strides = array<i32>} : memref<16x1xf32, #tpu.memory_space<vmem>>, vector<16x1xf32>,
    return
  }
  func.func @transform_0(%arg0: i32, %arg1: i32) -> (i32, i32) {
    %c0_i32 = arith.constant 0 : i32
    %c0_i32_0 = arith.constant 0 : i32
    return %arg0, %c0_i32 : i32, i32
  }
  func.func @transform_1(%arg0: i32, %arg1: i32) -> (i32, i32) {
    %c0_i32 = arith.constant 0 : i32
    return %arg0, %arg1 : i32, i32
  }
  func.func @transform_2(%arg0: i32, %arg1: i32) -> (i32, i32) {
    %c0_i32 = arith.constant 0 : i32
    %c0_i32_0 = arith.constant 0 : i32
    return %c0_i32, %arg1 : i32, i32
  }
  func.func @transform_3(%arg0: i32, %arg1: i32) -> (i32, i32) {
    %c0_i32 = arith.constant 0 : i32
    %c0_i32_0 = arith.constant 0 : i32
    return %arg0, %c0_i32 : i32, i32
  }
}

</mosaic_0001>

<bundles_post_ra>
// kernel: tpu_custom_call.1
= control target key start
LH: loop header
LB: loop body
LE: loop exit
PB: predicated region body
PF: predicated region fallthrough
CT: control target
= control target key end

     0   :  { %8 = vsyncpa [#allocation3], 0  ;;  %s380_s0 = inlined_call_operand.hbm [shape: f32[16,32], index: 0, kind: input, shape index: {}]   ;;  %s381_s1 = inlined_call_operand.hbm [shape: f32[16,32], index: 1, kind: input, shape index: {}]   ;;  %s382_s2 = inlined_call_operand.hbm [shape: f32[32,32], index: 2, kind: input, shape index: {}]   ;;  %s383_s3 = inlined_call_operand.vmem [shape: f32[16,1], index: 3, kind: output, shape index: {}]  }
   0x1   :  { %9 = vsyncpa [#allocation5], 0  ;;  %s276_s12 = smov [#allocation4]   ;;  %s277_s14 = smov [#allocation2]  }
   0x2   :  { %s27_s13 = sshll.u32 %s276_s12, 4  ;;  %s15_s15 = sshll.u32 %s277_s14, 4  ;;  %s28_s13 = int_to_ptr.vmem [resolvable:$true] %s27_s13  ;;  %s302_s15 = int_to_ptr.vmem [resolvable:$true] %s15_s15 }
   0x3   :  { %s206_s18 = scalar_lea.hbm %s381_s1, 256 }
   0x4   :  { %p207_p0 = scmp.ne.s32.totalorder %s381_s1, %s206_s18  ;;  %p210_p1 = scmp.lt.u32.totalorder %s206_s18, %s381_s1 }
   0x6   :  { %p212_p2 = pnand %p210_p1, %p207_p0 }
   0x8   :  { %215 = shalt.err (!%p212_p2)
}
   0x9   :  { %s216_s23 = scalar_lea.vmem %s28_s13, 256  ;;  %p221_p4 = scmp.lt.s32.totalorder %s28_s13, %s28_s13 }
   0xa   :  { %p217_p3 = scmp.ne.s32.totalorder %s28_s13, %s216_s23  ;;  %p222_p5 = scmp.lt.s32.totalorder %s216_s23, %s216_s23 }
   0xc   :  { %p223_p6 = por %p222_p5, %p221_p4 }
   0xe   :  { %p224_p7 = pnand %p223_p6, %p217_p3 }
  0x10   :  { %227 = shalt.err (!%p224_p7)
}
  0x11   :  { %s278_s24 = smov 128   ;;  %s279_s25 = smov 8  }
  0x12   :  { %33 = dma.hbm_to_vmem [thread:$0]  %s381_s1, 256, %s28_s13, [#allocation5], %s278_s24, %s278_s24, %s279_s25  }
  0x13   :  { %s228_s30 = scalar_lea.hbm %s380_s0, 256 }
  0x14   :  { %p229_p8 = scmp.ne.s32.totalorder %s380_s0, %s228_s30  ;;  %p232_p9 = scmp.lt.u32.totalorder %s228_s30, %s380_s0 }
  0x16   :  { %p234_p10 = pnand %p232_p9, %p229_p8 }
  0x18   :  { %237 = shalt.err (!%p234_p10)
}
  0x19   :  { %s238_s8 = scalar_lea.vmem %s302_s15, 256  ;;  %p243_p12 = scmp.lt.s32.totalorder %s302_s15, %s302_s15 }
  0x1a   :  { %p239_p11 = scmp.ne.s32.totalorder %s302_s15, %s238_s8  ;;  %p244_p13 = scmp.lt.s32.totalorder %s238_s8, %s238_s8 }
  0x1c   :  { %p245_p0 = por %p244_p13, %p243_p12 }
  0x1e   :  { %p246_p1 = pnand %p245_p0, %p239_p11 }
  0x20   :  { %249 = shalt.err (!%p246_p1)
}
  0x21   :  { %21 = dma.hbm_to_vmem [thread:$0]  %s380_s0, 256, %s302_s15, [#allocation3], %s278_s24, %s278_s24, %s279_s25  }
  0x22   :  { %s280_s10 = smov [#allocation6]   ;;  %s250_s14 = scalar_lea.hbm %s382_s2, 512 }
  0x23   :  { %s39_s11 = sshll.u32 %s280_s10, 4  ;;  %p251_p2 = scmp.ne.s32.totalorder %s382_s2, %s250_s14  ;;  %s40_s11 = int_to_ptr.vmem [resolvable:$true] %s39_s11 }
  0x24   :  { %p254_p3 = scmp.lt.u32.totalorder %s250_s14, %s382_s2 }
  0x26   :  { %p256_p4 = pnand %p254_p3, %p251_p2 }
  0x28   :  { %259 = shalt.err (!%p256_p4)
}
  0x29   :  { %s260_s20 = scalar_lea.vmem %s40_s11, 512  ;;  %p265_p6 = scmp.lt.s32.totalorder %s40_s11, %s40_s11 }
  0x2a   :  { %p261_p5 = scmp.ne.s32.totalorder %s40_s11, %s260_s20  ;;  %p266_p7 = scmp.lt.s32.totalorder %s260_s20, %s260_s20 }
  0x2c   :  { %p267_p8 = por %p266_p7, %p265_p6 }
  0x2e   :  { %p268_p9 = pnand %p267_p8, %p261_p5 }
  0x30   :  { %271 = shalt.err (!%p268_p9)
}
  0x31   :  { %45 = dma.hbm_to_vmem [thread:$0]  %s382_s2, 512, %s40_s11, [#allocation5], %s278_s24, %s278_s24, %s279_s25  }
  0x32   :  { %272 = dma.done.wait [#allocation3], 256  }
  0x33   :  { %273 = vsyncadd [#allocation3], 4294967040 }
  0x34   :  { %274 = dma.done.wait [#allocation5], 768  }
  0x35   :  { %275 = vsyncadd [#allocation5], 4294966528  ;;  %vm68_vm0 = vcmask 261120   ;;  %v64_v0 = vld [vmem:[#allocation6] sm:$0xff]  ;;  %v65_v1 = vld [vmem:[#allocation6 + $0x8] sm:$0xff]  ;;  %vm59_vm1 = vcmask 7168  }
  0x36   :  { %v66_v2 = vld [vmem:[#allocation6 + $0x10] sm:$0xff]  ;;  %v192_v3 = vpack.c.bf16 %v65_v1, %v64_v0  ;;  %v67_v4 = vld [vmem:[#allocation6 + $0x18] sm:$0xff]  ;;  %v62_v5 = vld [vmem:[#allocation2] sm:$0xff]  ;;  %v281_v8 = vmov 0.0  }
  0x37   :  { %v196_v6 = vpack.c.bf16 %v67_v4, %v66_v2  ;;  %189 = vmatprep.mubr.msk.f32.mxu0 %vm68_vm0, %v62_v5  ;;  %v63_v7 = vld [vmem:[#allocation2 + $0x8] sm:$0xff]  ;;  %60 = vst.msk [vmem:[%s383_s3] sm:$0xff] %vm59_vm1, %v281_v8  ;;  %61 = vst.msk [vmem:[%s383_s3 + $0x8] sm:$0xff] %vm59_vm1, %v281_v8  ;;  %v150_v9 = vld [vmem:[#allocation4] sm:$0xff] }
  0x38   :  { %193 = vmatprep.subr.bf16.mxu0 %v192_v3  ;;  %v151_v11 = vld [vmem:[#allocation4 + $0x8] sm:$0xff] }
  0x39   :  { %195 = vmatpush3.bf16.msra.mxu0 %v192_v3 }
  0x3a   :  { %197 = vmatprep.subr.bf16.mxu0 %v196_v6 }
  0x3d   :  { %199 = vmatpush3.bf16.msra.mxu0 %v196_v6 }
  0x3e   :  { %v154_v17 = vld [vmem:[%s383_s3] sm:$0xff]  ;;  %v155_v20 = vld [vmem:[%s383_s3 + $0x8] sm:$0xff] }
  0x40   :  { %190 = vmatmul.mubr.msk.f32.vlgmr.msra.gmra.mrb[0].mxu0 %vm68_vm0, %v63_v7 }
 0x113   :  { %v191_v10 = vpop.f32.mrb[0].mxu0 }
 0x114   :  { %v141_v12 = vpop.f32.mrb[1].mxu0  ;;  %v153_v14 = vmul.f32 %v191_v10, %v151_v11 }
 0x115   :  { %v152_v13 = vmul.f32 %v150_v9, %v141_v12 }
 0x116   :  { %v159_v16 = vsel %vm68_vm0, %v153_v14, 0.0 }
 0x117   :  { %v156_v15 = vsel %vm68_vm0, %v152_v13, 0.0 }
 0x118   :  { %157 = vadd.xlane.f32.xlu0 %v156_v15 }
 0x11c   :  { %160 = vadd.xlane.f32.xlu0 %v159_v16 }
 0x1a5   :  { %v158_v18 = vpop.xlane.xlu0 %157 }
 0x1a6   :  { %v162_v19 = vadd.f32 %v158_v18, %v154_v17 }
 0x1a8   :  { %165 = vst.msk [vmem:[%s383_s3] sm:$0xff] %vm59_vm1, %v162_v19 }
 0x1a9   :  { %v161_v21 = vpop.xlane.xlu0 %160 }
 0x1aa   :  { %v163_v22 = vadd.f32 %v161_v21, %v155_v20 }
 0x1ac   :  { %166 = vst.msk [vmem:[%s383_s3 + $0x8] sm:$0xff] %vm59_vm1, %v163_v22 }
 0x1ad   :  { %171 = vsyncpa [#allocation3], 1 }
 0x1ae   :  { %172 = vsyncpa [#allocation5], 1 }

</bundles_post_ra>
